<compile_context>
chip_gen: v6e
topology: v6e:2x2x1
jax: 0.10.0
libtpu: 0.0.40
codegen_flags: <defaults>
</compile_context>

<pallas_src>
import functools

import jax
import jax.numpy as jnp
from jax.experimental import pallas as pl
from jax.experimental.pallas import tpu as pltpu

HIDDEN = 30  # fixed in the PyTorch module


def _round_up(x: int, m: int) -> int:
    return ((x + m - 1) // m) * m


def _mlp_kernel(x_ref, w1_ref, b1_ref, w2_ref, b2_ref, o_ref):
    # x_ref  : [B,  n_in]  unpadded state block (f32)
    # w1_ref : [n_in, Hp]  f32 (only real rows stored; hidden lane-dense at 128)
    # b1_ref : [1,  Hp]    f32
    # w2_ref : [Hp, Op]    bf16 (rows >= hidden are zero)
    # b2_ref : [1,  Op]    f32
    # o_ref  : [B, n_out]  (small path)  or  [TB, Op] lane-dense (batched path)
    B, n_in = x_ref.shape          # static at trace time
    x = x_ref[...]                 # [B, n_in]

    # ---- Layer 1 on the VPU: n_in broadcast-FMAs onto a [B, Hp] tile ----
    h = b1_ref[...]                                   # [1, Hp]
    for k in range(n_in):                             # n_in = 5 -> unrolled
        h = h + x[:, k:k + 1] * w1_ref[k:k + 1, :]    # [B,1]*[1,Hp] -> [B,Hp]
    h = jnp.maximum(h, 0.0)                           # ReLU
    h_bf = h.astype(jnp.bfloat16)                     # bf16 activations for L2

    # ---- Layer 2 ----
    if B % 8 == 0:
        # Sublane-aligned rows -> MXU, bf16 x bf16 with f32 accumulation.
        q = jnp.dot(h_bf, w2_ref[...], preferred_element_type=jnp.float32)
    else:
        # Tiny ragged batch (e.g. the interactive B=2 case): one MXU pass would
        # pay the full weight-push/fill latency for <1% utilization and would
        # need row padding.  30 broadcast-FMAs on the VPU are cheaper and avoid
        # unaligned-matmul lowering.  Same numerics: bf16-rounded operands,
        # exact f32 products, f32 accumulation.
        hf = h_bf.astype(jnp.float32)                 # [B, Hp]
        w2f = w2_ref[...].astype(jnp.float32)         # [Hp, Op]
        q = jnp.zeros((B, w2_ref.shape[1]), jnp.float32)
        for j in range(HIDDEN):                       # only rows < 30 are nonzero
            q = q + hf[:, j:j + 1] * w2f[j:j + 1, :]

    q = q + b2_ref[...]

    bo, no = o_ref.shape
    o_ref[...] = q[:bo, :no].astype(o_ref.dtype)


@functools.partial(jax.jit, static_argnames=("n_out",))
def network_forward(state, w1p, b1p, w2p, b2p, *, n_out):
    """Small-batch (interactive) path: single fused kernel, no grid.

    state: [B, n_in] f32, padded params from prepare_params -> [B, n_out] f32.
    """
    B = state.shape[0]
    vmem = pl.BlockSpec(memory_space=pltpu.MemorySpace.VMEM)
    return pl.pallas_call(
        _mlp_kernel,
        out_shape=jax.ShapeDtypeStruct((B, n_out), jnp.float32),
        in_specs=[vmem, vmem, vmem, vmem, vmem],
        out_specs=vmem,
    )(state, w1p, b1p, w2p, b2p)


@functools.partial(jax.jit, static_argnames=("n_out", "block_b"))
def network_forward_batched(state, w1p, b1p, w2p, b2p, *, n_out, block_b=512):
    """Replay-batch path: batch grid with weight-resident blocks.

    * Weights/biases use a constant index_map -> fetched once, stay in VMEM.
    * Output is written lane-dense as [TB, Op] (Op = 128) and sliced to n_out
      here, avoiding 3-lane masked vst.msk writebacks.
    * The batch axis is marked "parallel" so v7x's two TensorCores split it;
      on v5e/v6e (one TC) the grid is just a pipelined serial loop.
    * VMEM note: per-tile footprint is ~TB*140*4 B + ~70 KiB of weights, so the
      default TB=512 is far under v5e's 16 MiB / v7x's 32 MiB scoped limits;
      raise block_b (512-2048) for HBM-roofline batches.
    """
    B, n_in = state.shape
    Hp = w1p.shape[1]
    Op = w2p.shape[1]
    TB = min(block_b, _round_up(B, 8))
    Bp = _round_up(B, TB)
    if Bp != B:
        state = jnp.pad(state, ((0, Bp - B), (0, 0)))

    out = pl.pallas_call(
        _mlp_kernel,
        out_shape=jax.ShapeDtypeStruct((Bp, Op), jnp.float32),
        grid=(Bp // TB,),
        in_specs=[
            pl.BlockSpec((TB, n_in), lambda i: (i, 0)),
            pl.BlockSpec((n_in, Hp), lambda i: (0, 0)),   # weight-resident
            pl.BlockSpec((1, Hp), lambda i: (0, 0)),
            pl.BlockSpec((Hp, Op), lambda i: (0, 0)),     # weight-resident
            pl.BlockSpec((1, Op), lambda i: (0, 0)),
        ],
        out_specs=pl.BlockSpec((TB, Op), lambda i: (i, 0)),
        compiler_params=pltpu.CompilerParams(
            dimension_semantics=("parallel",),
        ),
    )(state, w1p, b1p, w2p, b2p)
    return out[:B, :n_out]


def prepare_params(w1, b1, w2, b2, *, n_in, n_out, n_hidden=HIDDEN):
    """One-time padding of params to TPU-friendly shapes (hoisted out of the
    per-call path).  Weights are stored [in, out] (transposed vs. PyTorch) so
    the kernel computes y = x @ W + b == x @ W_pt.T + b.  Zero padding is exact
    (contributes 0 through both matmuls, ReLU(0) = 0).  w1 needs no row padding
    (layer 1 is computed on the VPU, only real rows are read); w2 is stored in
    bfloat16 to halve its per-call DMA (MXU accumulates in f32)."""
    Hp = _round_up(max(n_hidden, 128), 128)  # lane-dense hidden width
    Op = _round_up(max(n_out, 128), 128)     # lane-dense second matmul
    w1p = jnp.zeros((n_in, Hp), jnp.float32).at[:, :n_hidden].set(w1)
    b1p = jnp.zeros((1, Hp), jnp.float32).at[0, :n_hidden].set(b1)
    w2p = jnp.zeros((Hp, Op), jnp.bfloat16).at[:n_hidden, :n_out].set(
        w2.astype(jnp.bfloat16))
    b2p = jnp.zeros((1, Op), jnp.float32).at[0, :n_out].set(b2)
    return w1p, b1p, w2p, b2p


def init_params(key, n_in, n_hidden, n_out):
    """Deterministic init mimicking nn.Linear (uniform +/- 1/sqrt(fan_in))."""
    k1, k2, k3, k4 = jax.random.split(key, 4)
    bound1 = 1.0 / jnp.sqrt(jnp.float32(n_in))
    bound2 = 1.0 / jnp.sqrt(jnp.float32(n_hidden))
    w1 = jax.random.uniform(k1, (n_in, n_hidden), jnp.float32, -bound1, bound1)
    b1 = jax.random.uniform(k2, (n_hidden,), jnp.float32, -bound1, bound1)
    w2 = jax.random.uniform(k3, (n_hidden, n_out), jnp.float32, -bound2, bound2)
    b2 = jax.random.uniform(k4, (n_out,), jnp.float32, -bound2, bound2)
    return w1, b1, w2, b2


if __name__ == "__main__":
    # Shapes matching the self-driving-car usage: 5 input signals -> 3 actions.
    n_in, n_out = 5, 3
    batch = 2

    key = jax.random.PRNGKey(0)
    k_x, k_p, k_big = jax.random.split(key, 3)
    state = jax.random.normal(k_x, (batch, n_in), jnp.float32)
    w1, b1, w2, b2 = init_params(k_p, n_in, HIDDEN, n_out)

    # Padding / bf16 cast hoisted to init time (runs once, not per forward call).
    w1p, b1p, w2p, b2p = prepare_params(w1, b1, w2, b2, n_in=n_in, n_out=n_out)

    # ---- small / interactive path ----
    q_values = network_forward(state, w1p, b1p, w2p, b2p, n_out=n_out)
    q_values = jax.block_until_ready(q_values)

    # Pure-JAX reference (exact f32 math via broadcast-sums; the layer-2
    # operands are rounded to bf16 exactly as the kernel does).
    def reference(x):
        h = jnp.maximum((x[:, :, None] * w1[None, :, :]).sum(axis=1) + b1, 0.0)
        h_bf = h.astype(jnp.bfloat16).astype(jnp.float32)
        w2_bf = w2.astype(jnp.bfloat16).astype(jnp.float32)
        return (h_bf[:, :, None] * w2_bf[None, :, :]).sum(axis=1) + b2

    ref_small = reference(state)
    assert q_values.shape == (batch, n_out)
    assert jnp.allclose(q_values, ref_small, atol=1e-5, rtol=1e-5)

    # bf16 weight storage only perturbs the f32 result at the ~1e-3 level.
    ref_f32 = (jnp.maximum(state @ w1 + b1, 0.0) @ w2 + b2)
    assert jnp.allclose(q_values, ref_f32, atol=5e-2, rtol=5e-2)

    # ---- replay-batch path (batch grid, weight-resident, lane-dense output) ----
    big_batch = 256
    big_state = jax.random.normal(k_big, (big_batch, n_in), jnp.float32)
    q_big = network_forward_batched(big_state, w1p, b1p, w2p, b2p,
                                    n_out=n_out, block_b=128)
    q_big = jax.block_until_ready(q_big)
    assert q_big.shape == (big_batch, n_out)
    assert jnp.allclose(q_big, reference(big_state), atol=1e-5, rtol=1e-5)

    print("KERNEL_OK")
</pallas_src>

<mosaic_0001>
module attributes {stable_mosaic.version = 11 : i64} {
  func.func @_mlp_kernel(%arg0: memref<2x5xf32, #tpu.memory_space<vmem>>, %arg1: memref<5x128xf32, #tpu.memory_space<vmem>>, %arg2: memref<1x128xf32, #tpu.memory_space<vmem>>, %arg3: memref<128x128xbf16, #tpu.memory_space<vmem>>, %arg4: memref<1x128xf32, #tpu.memory_space<vmem>>, %arg5: memref<2x3xf32, #tpu.memory_space<vmem>>) attributes {dimension_semantics = [], scalar_prefetch = 0 : i64, scratch_operands = 0 : i64, tpu.core_type = #tpu.core_type<tc>} {
    %c0 = arith.constant 0 : index
    %c0_0 = arith.constant 0 : index
    %0 = vector.load %arg0[%c0, %c0_0] : memref<2x5xf32, #tpu.memory_space<vmem>>, vector<2x5xf32>
    %c0_1 = arith.constant 0 : index
    %c0_2 = arith.constant 0 : index
    %1 = vector.load %arg2[%c0_1, %c0_2] : memref<1x128xf32, #tpu.memory_space<vmem>>, vector<1x128xf32>
    %2 = vector.extract_strided_slice %0 {offsets = [0, 0], sizes = [2, 1], strides = [1, 1]} : vector<2x5xf32> to vector<2x1xf32>
    %c0_3 = arith.constant 0 : index
    %c0_4 = arith.constant 0 : index
    %3 = vector.load %arg1[%c0_3, %c0_4] : memref<5x128xf32, #tpu.memory_space<vmem>>, vector<1x128xf32>
    %4 = vector.broadcast %2 : vector<2x1xf32> to vector<2x128xf32>
    %5 = vector.broadcast %3 : vector<1x128xf32> to vector<2x128xf32>
    %6 = arith.mulf %4, %5 : vector<2x128xf32>
    %7 = vector.broadcast %1 : vector<1x128xf32> to vector<2x128xf32>
    %8 = arith.addf %7, %6 : vector<2x128xf32>
    %9 = vector.extract_strided_slice %0 {offsets = [0, 1], sizes = [2, 1], strides = [1, 1]} : vector<2x5xf32> to vector<2x1xf32>
    %c1 = arith.constant 1 : index
    %c0_5 = arith.constant 0 : index
    %10 = vector.load %arg1[%c1, %c0_5] : memref<5x128xf32, #tpu.memory_space<vmem>>, vector<1x128xf32>
    %11 = vector.broadcast %9 : vector<2x1xf32> to vector<2x128xf32>
    %12 = vector.broadcast %10 : vector<1x128xf32> to vector<2x128xf32>
    %13 = arith.mulf %11, %12 : vector<2x128xf32>
    %14 = arith.addf %8, %13 : vector<2x128xf32>
    %15 = vector.extract_strided_slice %0 {offsets = [0, 2], sizes = [2, 1], strides = [1, 1]} : vector<2x5xf32> to vector<2x1xf32>
    %c2 = arith.constant 2 : index
    %c0_6 = arith.constant 0 : index
    %16 = vector.load %arg1[%c2, %c0_6] : memref<5x128xf32, #tpu.memory_space<vmem>>, vector<1x128xf32>
    %17 = vector.broadcast %15 : vector<2x1xf32> to vector<2x128xf32>
    %18 = vector.broadcast %16 : vector<1x128xf32> to vector<2x128xf32>
    %19 = arith.mulf %17, %18 : vector<2x128xf32>
    %20 = arith.addf %14, %19 : vector<2x128xf32>
    %21 = vector.extract_strided_slice %0 {offsets = [0, 3], sizes = [2, 1], strides = [1, 1]} : vector<2x5xf32> to vector<2x1xf32>
    %c3 = arith.constant 3 : index
    %c0_7 = arith.constant 0 : index
    %22 = vector.load %arg1[%c3, %c0_7] : memref<5x128xf32, #tpu.memory_space<vmem>>, vector<1x128xf32>
    %23 = vector.broadcast %21 : vector<2x1xf32> to vector<2x128xf32>
    %24 = vector.broadcast %22 : vector<1x128xf32> to vector<2x128xf32>
    %25 = arith.mulf %23, %24 : vector<2x128xf32>
    %26 = arith.addf %20, %25 : vector<2x128xf32>
    %27 = vector.extract_strided_slice %0 {offsets = [0, 4], sizes = [2, 1], strides = [1, 1]} : vector<2x5xf32> to vector<2x1xf32>
    %c4 = arith.constant 4 : index
    %c0_8 = arith.constant 0 : index
    %28 = vector.load %arg1[%c4, %c0_8] : memref<5x128xf32, #tpu.memory_space<vmem>>, vector<1x128xf32>
    %29 = vector.broadcast %27 : vector<2x1xf32> to vector<2x128xf32>
    %30 = vector.broadcast %28 : vector<1x128xf32> to vector<2x128xf32>
    %31 = arith.mulf %29, %30 : vector<2x128xf32>
    %32 = arith.addf %26, %31 : vector<2x128xf32>
    %cst = arith.constant 0.000000e+00 : f32
    %33 = vector.broadcast %cst : f32 to vector<2x128xf32>
    %34 = arith.maximumf %32, %33 : vector<2x128xf32>
    %35 = arith.truncf %34 : vector<2x128xf32> to vector<2x128xbf16>
    %36 = arith.extf %35 : vector<2x128xbf16> to vector<2x128xf32>
    %c0_9 = arith.constant 0 : index
    %c0_10 = arith.constant 0 : index
    %37 = vector.load %arg3[%c0_9, %c0_10] : memref<128x128xbf16, #tpu.memory_space<vmem>>, vector<128x128xbf16>
    %38 = arith.extf %37 : vector<128x128xbf16> to vector<128x128xf32>
    %cst_11 = arith.constant 0.000000e+00 : f32
    %39 = vector.broadcast %cst_11 : f32 to vector<2x128xf32>
    %40 = vector.extract_strided_slice %36 {offsets = [0, 0], sizes = [2, 1], strides = [1, 1]} : vector<2x128xf32> to vector<2x1xf32>
    %41 = vector.extract_strided_slice %38 {offsets = [0, 0], sizes = [1, 128], strides = [1, 1]} : vector<128x128xf32> to vector<1x128xf32>
    %42 = vector.broadcast %40 : vector<2x1xf32> to vector<2x128xf32>
    %43 = vector.broadcast %41 : vector<1x128xf32> to vector<2x128xf32>
    %44 = arith.mulf %42, %43 : vector<2x128xf32>
    %45 = arith.addf %39, %44 : vector<2x128xf32>
    %46 = vector.extract_strided_slice %36 {offsets = [0, 1], sizes = [2, 1], strides = [1, 1]} : vector<2x128xf32> to vector<2x1xf32>
    %47 = vector.extract_strided_slice %38 {offsets = [1, 0], sizes = [1, 128], strides = [1, 1]} : vector<128x128xf32> to vector<1x128xf32>
    %48 = vector.broadcast %46 : vector<2x1xf32> to vector<2x128xf32>
    %49 = vector.broadcast %47 : vector<1x128xf32> to vector<2x128xf32>
    %50 = arith.mulf %48, %49 : vector<2x128xf32>
    %51 = arith.addf %45, %50 : vector<2x128xf32>
    %52 = vector.extract_strided_slice %36 {offsets = [0, 2], sizes = [2, 1], strides = [1, 1]} : vector<2x128xf32> to vector<2x1xf32>
    %53 = vector.extract_strided_slice %38 {offsets = [2, 0], sizes = [1, 128], strides = [1, 1]} : vector<128x128xf32> to vector<1x128xf32>
    %54 = vector.broadcast %52 : vector<2x1xf32> to vector<2x128xf32>
    %55 = vector.broadcast %53 : vector<1x128xf32> to vector<2x128xf32>
    %56 = arith.mulf %54, %55 : vector<2x128xf32>
    %57 = arith.addf %51, %56 : vector<2x128xf32>
    %58 = vector.extract_strided_slice %36 {offsets = [0, 3], sizes = [2, 1], strides = [1, 1]} : vector<2x128xf32> to vector<2x1xf32>
    %59 = vector.extract_strided_slice %38 {offsets = [3, 0], sizes = [1, 128], strides = [1, 1]} : vector<128x128xf32> to vector<1x128xf32>
    %60 = vector.broadcast %58 : vector<2x1xf32> to vector<2x128xf32>
    %61 = vector.broadcast %59 : vector<1x128xf32> to vector<2x128xf32>
    %62 = arith.mulf %60, %61 : vector<2x128xf32>
    %63 = arith.addf %57, %62 : vector<2x128xf32>
    %64 = vector.extract_strided_slice %36 {offsets = [0, 4], sizes = [2, 1], strides = [1, 1]} : vector<2x128xf32> to vector<2x1xf32>
    %65 = vector.extract_strided_slice %38 {offsets = [4, 0], sizes = [1, 128], strides = [1, 1]} : vector<128x128xf32> to vector<1x128xf32>
    %66 = vector.broadcast %64 : vector<2x1xf32> to vector<2x128xf32>
    %67 = vector.broadcast %65 : vector<1x128xf32> to vector<2x128xf32>
    %68 = arith.mulf %66, %67 : vector<2x128xf32>
    %69 = arith.addf %63, %68 : vector<2x128xf32>
    %70 = vector.extract_strided_slice %36 {offsets = [0, 5], sizes = [2, 1], strides = [1, 1]} : vector<2x128xf32> to vector<2x1xf32>
    %71 = vector.extract_strided_slice %38 {offsets = [5, 0], sizes = [1, 128], strides = [1, 1]} : vector<128x128xf32> to vector<1x128xf32>
    %72 = vector.broadcast %70 : vector<2x1xf32> to vector<2x128xf32>
    %73 = vector.broadcast %71 : vector<1x128xf32> to vector<2x128xf32>
    %74 = arith.mulf %72, %73 : vector<2x128xf32>
    %75 = arith.addf %69, %74 : vector<2x128xf32>
    %76 = vector.extract_strided_slice %36 {offsets = [0, 6], sizes = [2, 1], strides = [1, 1]} : vector<2x128xf32> to vector<2x1xf32>
    %77 = vector.extract_strided_slice %38 {offsets = [6, 0], sizes = [1, 128], strides = [1, 1]} : vector<128x128xf32> to vector<1x128xf32>
    %78 = vector.broadcast %76 : vector<2x1xf32> to vector<2x128xf32>
    %79 = vector.broadcast %77 : vector<1x128xf32> to vector<2x128xf32>
    %80 = arith.mulf %78, %79 : vector<2x128xf32>
    %81 = arith.addf %75, %80 : vector<2x128xf32>
    %82 = vector.extract_strided_slice %36 {offsets = [0, 7], sizes = [2, 1], strides = [1, 1]} : vector<2x128xf32> to vector<2x1xf32>
    %83 = vector.extract_strided_slice %38 {offsets = [7, 0], sizes = [1, 128], strides = [1, 1]} : vector<128x128xf32> to vector<1x128xf32>
    %84 = vector.broadcast %82 : vector<2x1xf32> to vector<2x128xf32>
    %85 = vector.broadcast %83 : vector<1x128xf32> to vector<2x128xf32>
    %86 = arith.mulf %84, %85 : vector<2x128xf32>
    %87 = arith.addf %81, %86 : vector<2x128xf32>
    %88 = vector.extract_strided_slice %36 {offsets = [0, 8], sizes = [2, 1], strides = [1, 1]} : vector<2x128xf32> to vector<2x1xf32>
    %89 = vector.extract_strided_slice %38 {offsets = [8, 0], sizes = [1, 128], strides = [1, 1]} : vector<128x128xf32> to vector<1x128xf32>
    %90 = vector.broadcast %88 : vector<2x1xf32> to vector<2x128xf32>
    %91 = vector.broadcast %89 : vector<1x128xf32> to vector<2x128xf32>
    %92 = arith.mulf %90, %91 : vector<2x128xf32>
    %93 = arith.addf %87, %92 : vector<2x128xf32>
    %94 = vector.extract_strided_slice %36 {offsets = [0, 9], sizes = [2, 1], strides = [1, 1]} : vector<2x128xf32> to vector<2x1xf32>
    %95 = vector.extract_strided_slice %38 {offsets = [9, 0], sizes = [1, 128], strides = [1, 1]} : vector<128x128xf32> to vector<1x128xf32>
    %96 = vector.broadcast %94 : vector<2x1xf32> to vector<2x128xf32>
    %97 = vector.broadcast %95 : vector<1x128xf32> to vector<2x128xf32>
    %98 = arith.mulf %96, %97 : vector<2x128xf32>
    %99 = arith.addf %93, %98 : vector<2x128xf32>
    %100 = vector.extract_strided_slice %36 {offsets = [0, 10], sizes = [2, 1], strides = [1, 1]} : vector<2x128xf32> to vector<2x1xf32>
    %101 = vector.extract_strided_slice %38 {offsets = [10, 0], sizes = [1, 128], strides = [1, 1]} : vector<128x128xf32> to vector<1x128xf32>
    %102 = vector.broadcast %100 : vector<2x1xf32> to vector<2x128xf32>
    %103 = vector.broadcast %101 : vector<1x128xf32> to vector<2x128xf32>
    %104 = arith.mulf %102, %103 : vector<2x128xf32>
    %105 = arith.addf %99, %104 : vector<2x128xf32>
    %106 = vector.extract_strided_slice %36 {offsets = [0, 11], sizes = [2, 1], strides = [1, 1]} : vector<2x128xf32> to vector<2x1xf32>
    %107 = vector.extract_strided_slice %38 {offsets = [11, 0], sizes = [1, 128], strides = [1, 1]} : vector<128x128xf32> to vector<1x128xf32>
    %108 = vector.broadcast %106 : vector<2x1xf32> to vector<2x128xf32>
    %109 = vector.broadcast %107 : vector<1x128xf32> to vector<2x128xf32>
    %110 = arith.mulf %108, %109 : vector<2x128xf32>
    %111 = arith.addf %105, %110 : vector<2x128xf32>
    %112 = vector.extract_strided_slice %36 {offsets = [0, 12], sizes = [2, 1], strides = [1, 1]} : vector<2x128xf32> to vector<2x1xf32>
    %113 = vector.extract_strided_slice %38 {offsets = [12, 0], sizes = [1, 128], strides = [1, 1]} : vector<128x128xf32> to vector<1x128xf32>
    %114 = vector.broadcast %112 : vector<2x1xf32> to vector<2x128xf32>
    %115 = vector.broadcast %113 : vector<1x128xf32> to vector<2x128xf32>
    %116 = arith.mulf %114, %115 : vector<2x128xf32>
    %117 = arith.addf %111, %116 : vector<2x128xf32>
    %118 = vector.extract_strided_slice %36 {offsets = [0, 13], sizes = [2, 1], strides = [1, 1]} : vector<2x128xf32> to vector<2x1xf32>
    %119 = vector.extract_strided_slice %38 {offsets = [13, 0], sizes = [1, 128], strides = [1, 1]} : vector<128x128xf32> to vector<1x128xf32>
    %120 = vector.broadcast %118 : vector<2x1xf32> to vector<2x128xf32>
    %121 = vector.broadcast %119 : vector<1x128xf32> to vector<2x128xf32>
    %122 = arith.mulf %120, %121 : vector<2x128xf32>
    %123 = arith.addf %117, %122 : vector<2x128xf32>
    %124 = vector.extract_strided_slice %36 {offsets = [0, 14], sizes = [2, 1], strides = [1, 1]} : vector<2x128xf32> to vector<2x1xf32>
    %125 = vector.extract_strided_slice %38 {offsets = [14, 0], sizes = [1, 128], strides = [1, 1]} : vector<128x128xf32> to vector<1x128xf32>
    %126 = vector.broadcast %124 : vector<2x1xf32> to vector<2x128xf32>
    %127 = vector.broadcast %125 : vector<1x128xf32> to vector<2x128xf32>
    %128 = arith.mulf %126, %127 : vector<2x128xf32>
    %129 = arith.addf %123, %128 : vector<2x128xf32>
    %130 = vector.extract_strided_slice %36 {offsets = [0, 15], sizes = [2, 1], strides = [1, 1]} : vector<2x128xf32> to vector<2x1xf32>
    %131 = vector.extract_strided_slice %38 {offsets = [15, 0], sizes = [1, 128], strides = [1, 1]} : vector<128x128xf32> to vector<1x128xf32>
    %132 = vector.broadcast %130 : vector<2x1xf32> to vector<2x128xf32>
    %133 = vector.broadcast %131 : vector<1x128xf32> to vector<2x128xf32>
    %134 = arith.mulf %132, %133 : vector<2x128xf32>
    %135 = arith.addf %129, %134 : vector<2x128xf32>
    %136 = vector.extract_strided_slice %36 {offsets = [0, 16], sizes = [2, 1], strides = [1, 1]} : vector<2x128xf32> to vector<2x1xf32>
    %137 = vector.extract_strided_slice %38 {offsets = [16, 0], sizes = [1, 128], strides = [1, 1]} : vector<128x128xf32> to vector<1x128xf32>
    %138 = vector.broadcast %136 : vector<2x1xf32> to vector<2x128xf32>
    %139 = vector.broadcast %137 : vector<1x128xf32> to vector<2x128xf32>
    %140 = arith.mulf %138, %139 : vector<2x128xf32>
    %141 = arith.addf %135, %140 : vector<2x128xf32>
    %142 = vector.extract_strided_slice %36 {offsets = [0, 17], sizes = [2, 1], strides = [1, 1]} : vector<2x128xf32> to vector<2x1xf32>
    %143 = vector.extract_strided_slice %38 {offsets = [17, 0], sizes = [1, 128], strides = [1, 1]} : vector<128x128xf32> to vector<1x128xf32>
    %144 = vector.broadcast %142 : vector<2x1xf32> to vector<2x128xf32>
    %145 = vector.broadcast %143 : vector<1x128xf32> to vector<2x128xf32>
    %146 = arith.mulf %144, %145 : vector<2x128xf32>
    %147 = arith.addf %141, %146 : vector<2x128xf32>
    %148 = vector.extract_strided_slice %36 {offsets = [0, 18], sizes = [2, 1], strides = [1, 1]} : vector<2x128xf32> to vector<2x1xf32>
    %149 = vector.extract_strided_slice %38 {offsets = [18, 0], sizes = [1, 128], strides = [1, 1]} : vector<128x128xf32> to vector<1x128xf32>
    %150 = vector.broadcast %148 : vector<2x1xf32> to vector<2x128xf32>
    %151 = vector.broadcast %149 : vector<1x128xf32> to vector<2x128xf32>
    %152 = arith.mulf %150, %151 : vector<2x128xf32>
    %153 = arith.addf %147, %152 : vector<2x128xf32>
    %154 = vector.extract_strided_slice %36 {offsets = [0, 19], sizes = [2, 1], strides = [1, 1]} : vector<2x128xf32> to vector<2x1xf32>
    %155 = vector.extract_strided_slice %38 {offsets = [19, 0], sizes = [1, 128], strides = [1, 1]} : vector<128x128xf32> to vector<1x128xf32>
    %156 = vector.broadcast %154 : vector<2x1xf32> to vector<2x128xf32>
    %157 = vector.broadcast %155 : vector<1x128xf32> to vector<2x128xf32>
    %158 = arith.mulf %156, %157 : vector<2x128xf32>
    %159 = arith.addf %153, %158 : vector<2x128xf32>
    %160 = vector.extract_strided_slice %36 {offsets = [0, 20], sizes = [2, 1], strides = [1, 1]} : vector<2x128xf32> to vector<2x1xf32>
    %161 = vector.extract_strided_slice %38 {offsets = [20, 0], sizes = [1, 128], strides = [1, 1]} : vector<128x128xf32> to vector<1x128xf32>
    %162 = vector.broadcast %160 : vector<2x1xf32> to vector<2x128xf32>
    %163 = vector.broadcast %161 : vector<1x128xf32> to vector<2x128xf32>
    %164 = arith.mulf %162, %163 : vector<2x128xf32>
    %165 = arith.addf %159, %164 : vector<2x128xf32>
    %166 = vector.extract_strided_slice %36 {offsets = [0, 21], sizes = [2, 1], strides = [1, 1]} : vector<2x128xf32> to vector<2x1xf32>
    %167 = vector.extract_strided_slice %38 {offsets = [21, 0], sizes = [1, 128], strides = [1, 1]} : vector<128x128xf32> to vector<1x128xf32>
    %168 = vector.broadcast %166 : vector<2x1xf32> to vector<2x128xf32>
    %169 = vector.broadcast %167 : vector<1x128xf32> to vector<2x128xf32>
    %170 = arith.mulf %168, %169 : vector<2x128xf32>
    %171 = arith.addf %165, %170 : vector<2x128xf32>
    %172 = vector.extract_strided_slice %36 {offsets = [0, 22], sizes = [2, 1], strides = [1, 1]} : vector<2x128xf32> to vector<2x1xf32>
    %173 = vector.extract_strided_slice %38 {offsets = [22, 0], sizes = [1, 128], strides = [1, 1]} : vector<128x128xf32> to vector<1x128xf32>
    %174 = vector.broadcast %172 : vector<2x1xf32> to vector<2x128xf32>
    %175 = vector.broadcast %173 : vector<1x128xf32> to vector<2x128xf32>
    %176 = arith.mulf %174, %175 : vector<2x128xf32>
    %177 = arith.addf %171, %176 : vector<2x128xf32>
    %178 = vector.extract_strided_slice %36 {offsets = [0, 23], sizes = [2, 1], strides = [1, 1]} : vector<2x128xf32> to vector<2x1xf32>
    %179 = vector.extract_strided_slice %38 {offsets = [23, 0], sizes = [1, 128], strides = [1, 1]} : vector<128x128xf32> to vector<1x128xf32>
    %180 = vector.broadcast %178 : vector<2x1xf32> to vector<2x128xf32>
    %181 = vector.broadcast %179 : vector<1x128xf32> to vector<2x128xf32>
    %182 = arith.mulf %180, %181 : vector<2x128xf32>
    %183 = arith.addf %177, %182 : vector<2x128xf32>
    %184 = vector.extract_strided_slice %36 {offsets = [0, 24], sizes = [2, 1], strides = [1, 1]} : vector<2x128xf32> to vector<2x1xf32>
    %185 = vector.extract_strided_slice %38 {offsets = [24, 0], sizes = [1, 128], strides = [1, 1]} : vector<128x128xf32> to vector<1x128xf32>
    %186 = vector.broadcast %184 : vector<2x1xf32> to vector<2x128xf32>
    %187 = vector.broadcast %185 : vector<1x128xf32> to vector<2x128xf32>
    %188 = arith.mulf %186, %187 : vector<2x128xf32>
    %189 = arith.addf %183, %188 : vector<2x128xf32>
    %190 = vector.extract_strided_slice %36 {offsets = [0, 25], sizes = [2, 1], strides = [1, 1]} : vector<2x128xf32> to vector<2x1xf32>
    %191 = vector.extract_strided_slice %38 {offsets = [25, 0], sizes = [1, 128], strides = [1, 1]} : vector<128x128xf32> to vector<1x128xf32>
    %192 = vector.broadcast %190 : vector<2x1xf32> to vector<2x128xf32>
    %193 = vector.broadcast %191 : vector<1x128xf32> to vector<2x128xf32>
    %194 = arith.mulf %192, %193 : vector<2x128xf32>
    %195 = arith.addf %189, %194 : vector<2x128xf32>
    %196 = vector.extract_strided_slice %36 {offsets = [0, 26], sizes = [2, 1], strides = [1, 1]} : vector<2x128xf32> to vector<2x1xf32>
    %197 = vector.extract_strided_slice %38 {offsets = [26, 0], sizes = [1, 128], strides = [1, 1]} : vector<128x128xf32> to vector<1x128xf32>
    %198 = vector.broadcast %196 : vector<2x1xf32> to vector<2x128xf32>
    %199 = vector.broadcast %197 : vector<1x128xf32> to vector<2x128xf32>
    %200 = arith.mulf %198, %199 : vector<2x128xf32>
    %201 = arith.addf %195, %200 : vector<2x128xf32>
    %202 = vector.extract_strided_slice %36 {offsets = [0, 27], sizes = [2, 1], strides = [1, 1]} : vector<2x128xf32> to vector<2x1xf32>
    %203 = vector.extract_strided_slice %38 {offsets = [27, 0], sizes = [1, 128], strides = [1, 1]} : vector<128x128xf32> to vector<1x128xf32>
    %204 = vector.broadcast %202 : vector<2x1xf32> to vector<2x128xf32>
    %205 = vector.broadcast %203 : vector<1x128xf32> to vector<2x128xf32>
    %206 = arith.mulf %204, %205 : vector<2x128xf32>
    %207 = arith.addf %201, %206 : vector<2x128xf32>
    %208 = vector.extract_strided_slice %36 {offsets = [0, 28], sizes = [2, 1], strides = [1, 1]} : vector<2x128xf32> to vector<2x1xf32>
    %209 = vector.extract_strided_slice %38 {offsets = [28, 0], sizes = [1, 128], strides = [1, 1]} : vector<128x128xf32> to vector<1x128xf32>
    %210 = vector.broadcast %208 : vector<2x1xf32> to vector<2x128xf32>
    %211 = vector.broadcast %209 : vector<1x128xf32> to vector<2x128xf32>
    %212 = arith.mulf %210, %211 : vector<2x128xf32>
    %213 = arith.addf %207, %212 : vector<2x128xf32>
    %214 = vector.extract_strided_slice %36 {offsets = [0, 29], sizes = [2, 1], strides = [1, 1]} : vector<2x128xf32> to vector<2x1xf32>
    %215 = vector.extract_strided_slice %38 {offsets = [29, 0], sizes = [1, 128], strides = [1, 1]} : vector<128x128xf32> to vector<1x128xf32>
    %216 = vector.broadcast %214 : vector<2x1xf32> to vector<2x128xf32>
    %217 = vector.broadcast %215 : vector<1x128xf32> to vector<2x128xf32>
    %218 = arith.mulf %216, %217 : vector<2x128xf32>
    %219 = arith.addf %213, %218 : vector<2x128xf32>
    %c0_12 = arith.constant 0 : index
    %c0_13 = arith.constant 0 : index
    %220 = vector.load %arg4[%c0_12, %c0_13] : memref<1x128xf32, #tpu.memory_space<vmem>>, vector<1x128xf32>
    %221 = vector.broadcast %220 : vector<1x128xf32> to vector<2x128xf32>
    %222 = arith.addf %219, %221 : vector<2x128xf32>
    %223 = vector.extract_strided_slice %222 {offsets = [0, 0], sizes = [2, 3], strides = [1, 1]} : vector<2x128xf32> to vector<2x3xf32>
    %c0_14 = arith.constant 0 : index
    %c0_15 = arith.constant 0 : index
    %224 = vector.load %arg5[%c0_14, %c0_15] : memref<2x3xf32, #tpu.memory_space<vmem>>, vector<2x3xf32>
    tpu.vector_store %arg5[%c0_14, %c0_15], %223 {strides = array<i32>} : memref<2x3xf32, #tpu.memory_space<vmem>>, vector<2x3xf32>,
    return
  }
}

</mosaic_0001>

<bundles_post_ra>
// kernel: network_forward.1
= control target key start
LH: loop header
LB: loop body
LE: loop exit
PB: predicated region body
PF: predicated region fallthrough
CT: control target
= control target key end

     0   :  { %10 = vsyncpa [#allocation3], 0  ;;  %s796_s0 = inlined_call_operand.hbm [shape: f32[2,5], index: 0, kind: input, shape index: {}]   ;;  %s797_s1 = inlined_call_operand.hbm [shape: f32[5,128], index: 1, kind: input, shape index: {}]   ;;  %s798_s2 = inlined_call_operand.vmem [shape: f32[1,128], index: 2, kind: input, shape index: {}]   ;;  %s799_s3 = inlined_call_operand.hbm [shape: bf16[128,128], index: 3, kind: input, shape index: {}]   ;;  %s800_s4 = inlined_call_operand.vmem [shape: f32[1,128], index: 4, kind: input, shape index: {}]   ;;  %s801_s5 = inlined_call_operand.hbm [shape: f32[2,3], index: 5, kind: output, shape index: {}]  }
   0x1   :  { %11 = vsyncpa [#allocation6], 0 }
   0x2   :  { %12 = vsyncpa [#allocation4], 0  ;;  %s634_s18 = smov [#allocation5]   ;;  %s635_s20 = smov [#allocation2]  }
   0x3   :  { %s29_s19 = sshll.u32 %s634_s18, 4  ;;  %s19_s21 = sshll.u32 %s635_s20, 4  ;;  %s30_s19 = int_to_ptr.vmem [resolvable:$true] %s29_s19  ;;  %s20_s21 = int_to_ptr.vmem [resolvable:$true] %s19_s21 }
   0x4   :  { %s556_s22 = scalar_lea.vmem %s30_s19, 128  ;;  %p561_p1 = scmp.lt.s32.totalorder %s30_s19, %s30_s19 }
   0x5   :  { %p557_p0 = scmp.ne.s32.totalorder %s30_s19, %s556_s22  ;;  %p562_p2 = scmp.lt.s32.totalorder %s556_s22, %s556_s22 }
   0x7   :  { %p563_p3 = por %p562_p2, %p561_p1 }
   0x9   :  { %p564_p4 = pnand %p563_p3, %p557_p0 }
   0xb   :  { %567 = shalt.err (!%p564_p4)
}
   0xc   :  { %32 = dma.hbm_to_vmem [thread:$0]  %s797_s1, 128, %s30_s19, [#allocation6]  }
   0xd   :  { %s576_s25 = scalar_lea.vmem %s20_s21, 32  ;;  %p581_p6 = scmp.lt.s32.totalorder %s20_s21, %s20_s21 }
   0xe   :  { %p577_p5 = scmp.ne.s32.totalorder %s20_s21, %s576_s25  ;;  %p582_p7 = scmp.lt.s32.totalorder %s576_s25, %s576_s25 }
  0x10   :  { %p583_p8 = por %p582_p7, %p581_p6 }
  0x12   :  { %p584_p9 = pnand %p583_p8, %p577_p5 }
  0x14   :  { %587 = shalt.err (!%p584_p9)
}
  0x15   :  { %22 = dma.hbm_to_vmem [thread:$0]  %s796_s0, 32, %s20_s21, [#allocation3]  }
  0x16   :  { %s636_s28 = smov [#allocation7]  }
  0x17   :  { %s40_s29 = sshll.u32 %s636_s28, 4  ;;  %s41_s29 = int_to_ptr.vmem [resolvable:$true] %s40_s29 }
  0x18   :  { %s596_s30 = scalar_lea.vmem %s41_s29, 1024  ;;  %p601_p11 = scmp.lt.s32.totalorder %s41_s29, %s41_s29 }
  0x19   :  { %p597_p10 = scmp.ne.s32.totalorder %s41_s29, %s596_s30  ;;  %p602_p12 = scmp.lt.s32.totalorder %s596_s30, %s596_s30 }
  0x1b   :  { %p603_p13 = por %p602_p12, %p601_p11 }
  0x1d   :  { %p604_p0 = pnand %p603_p13, %p597_p10 }
  0x1f   :  { %607 = shalt.err (!%p604_p0)
}
  0x20   :  { %s637_s1 = smov 64   ;;  %s638_s6 = smov 4  }
  0x21   :  { %46 = dma.hbm_to_vmem [thread:$0]  %s799_s3, 1024, %s41_s29, [#allocation6], %s637_s1, %s637_s1, %s638_s6  }
  0x22   :  { %628 = dma.done.wait [#allocation3], 32  }
  0x23   :  { %629 = vsyncadd [#allocation3], 4294967264 }
  0x24   :  { %630 = dma.done.wait [#allocation6], 1152  }
  0x25   :  { %631 = vsyncadd [#allocation6], 4294966144  ;;  %v639_v0 = vmov 0   ;;  %v640_v1 = vmov 2   ;;  %v58_v2 = vld [vmem:[#allocation2] sm:$0x3]  ;;  %v138_v55 = vlaneseq }
  0x26   :  { %512 = vset.pattern.permute.xlu0 %v639_v0  ;;  %514 = vset.pattern.permute.xlu1 %v640_v1  ;;  %v641_v3 = vmov 1   ;;  %v642_v4 = vmov 3   ;;  %v643_v5 = vmov 4   ;;  %v460_v6 = vld [vmem:[#allocation5] ss:$0 sm:$0xff]  ;;  %v644_v30 = vmov 6  }
  0x27   :  { %63 = vperm.xlu0 %512, %v58_v2   ;;  %91 = vperm.xlu1 %514, %v58_v2   ;;  %v461_v10 = vld [vmem:[%s798_s2] ss:$0 sm:$0xff]  ;;  %v462_v11 = vld [vmem:[#allocation5 + $0x1] ss:$0 sm:$0xff]  ;;  %v463_v12 = vld [vmem:[#allocation5 + $0x2] ss:$0 sm:$0xff] }
  0x28   :  { %v464_v17 = vld [vmem:[#allocation5 + $0x3] ss:$0 sm:$0xff]  ;;  %v465_v20 = vld [vmem:[#allocation5 + $0x4] ss:$0 sm:$0xff]  ;;  %v645_v31 = vmov 5   ;;  %v646_v32 = vmov 9  }
  0x29   :  { %v647_v33 = vmov 7   ;;  %v648_v34 = vmov 12   ;;  %v649_v35 = vmov 8   ;;  %v650_v36 = vmov 15   ;;  %v468_v57 = vld [vmem:[#allocation7] sm:$0xff]   ;;  %s669_s10 = smov [#allocation8]  }
  0x2a   :  { %v651_v37 = vmov 10   ;;  %v652_v38 = vmov 18   ;;  %v653_v39 = vmov 11   ;;  %v654_v40 = vmov 21   ;;  %s450_s11 = sshll.u32 %s669_s10, 4  ;;  %s451_s11 = int_to_ptr.vmem [resolvable:$true] %s450_s11 }
  0x2b   :  { %513 = vset.pattern.permute.xlu0 %v641_v3  ;;  %515 = vset.pattern.permute.xlu1 %v642_v4  ;;  %v655_v41 = vmov 13   ;;  %v656_v42 = vmov 24   ;;  %v657_v43 = vmov 14   ;;  %v658_v44 = vmov 27   ;;  %s608_s12 = scalar_lea.vmem %s451_s11, 32  ;;  %p613_p2 = scmp.lt.s32.totalorder %s451_s11, %s451_s11 }
  0x2c   :  { %80 = vperm.xlu0 %513, %v58_v2   ;;  %102 = vperm.xlu1 %515, %v58_v2   ;;  %v659_v45 = vmov 16   ;;  %v660_v46 = vmov 29   ;;  %v661_v47 = vmov 17   ;;  %v662_v48 = vmov 19   ;;  %p609_p1 = scmp.ne.s32.totalorder %s451_s11, %s608_s12  ;;  %p614_p3 = scmp.lt.s32.totalorder %s608_s12, %s608_s12 }
  0x2d   :  { %v663_v49 = vmov 20   ;;  %v664_v50 = vmov 22   ;;  %v665_v51 = vmov 23   ;;  %v666_v52 = vmov 25  }
  0x2e   :  { %v667_v53 = vmov 26   ;;  %v668_v54 = vmov 28   ;;  %v139_v56 = vshrl.u32 %v138_v55, 7  ;;  %v469_v58 = vunpack.c.l.bf16 %v468_v57  ;;  %p615_p4 = por %p614_p3, %p613_p2 }
  0x2f   :  { %vm442_vm0 = vcmask 17408  }
  0x30   :  { %516 = vset.pattern.permute.xlu1 %v643_v5  ;;  %517 = vset.pattern.permute.xlu0 %v639_v0  ;;  %v744_v59 = vsub.s32 1, %v139_v56  ;;  %v746_v60 = vsub.s32 0, %v139_v56  ;;  %v750_v63 = vsub.s32 2, %v139_v56  ;;  %p616_p5 = pnand %p615_p4, %p609_p1 }
  0x31   :  { %113 = vperm.xlu1 %516, %v58_v2  }
  0x32   :  { %v151_v61 = vrot.slane %v469_v58, %v744_v59  ;;  %v141_v62 = vrot.slane %v469_v58, %v746_v60 }
  0x35   :  { %518 = vset.pattern.permute.xlu1 %v641_v3 }
  0xa2   :  { %v64_v7 = vpop.permute.xlu0 %63  ;;  %v92_v8 = vpop.permute.xlu1 %91 }
  0xa3   :  { %v70_v9 = vmul.f32 %v460_v6, %v64_v7  ;;  %v98_v18 = vmul.f32 %v463_v12, %v92_v8  ;;  %v755_v6 = vsub.s32 4, %v139_v56 }
  0xa5   :  { %v77_v15 = vadd.f32 %v461_v10, %v70_v9 }
  0xa7   :  { %v81_v13 = vpop.permute.xlu0 %80  ;;  %v103_v14 = vpop.permute.xlu1 %102 }
  0xa8   :  { %v87_v16 = vmul.f32 %v462_v11, %v81_v13  ;;  %v109_v22 = vmul.f32 %v464_v17, %v103_v14  ;;  %v181_v13 = vrot.slane %v469_v58, %v755_v6  ;;  %v759_v14 = vsub.s32 5, %v139_v56 }
  0xaa   :  { %v88_v19 = vadd.f32 %v87_v16, %v77_v15 }
  0xac   :  { %v99_v21 = vadd.f32 %v98_v18, %v88_v19  ;;  %v114_v23 = vpop.permute.xlu1 %113  ;;  %v761_v19 = vsub.s32 6, %v139_v56 }
  0xad   :  { %v120_v24 = vmul.f32 %v465_v20, %v114_v23  ;;  %v191_v20 = vrot.slane %v469_v58, %v759_v14 }
  0xae   :  { %v110_v25 = vadd.f32 %v109_v22, %v99_v21  ;;  %v764_v21 = vsub.s32 7, %v139_v56 }
  0xb0   :  { %v121_v26 = vadd.f32 %v120_v24, %v110_v25  ;;  %v201_v24 = vrot.slane %v469_v58, %v761_v19 }
  0xb2   :  { %v122_v27 = vmax.f32 %v121_v26, 0.0 }
  0xb4   :  { %v123_v28 = vpack.c.bf16 %v122_v27, %v122_v27 }
  0xb6   :  { %v712_v29 = vunpack.c.l.bf16 %v123_v28  ;;  %v211_v28 = vrot.slane %v469_v58, %v764_v21 }
  0xb8   :  { %145 = vperm.xlu1 %518, %v712_v29   ;;  %135 = vperm.xlu0 %517, %v712_v29  }
  0xbc   :  { %519 = vset.pattern.permute.xlu1 %v640_v1  ;;  %520 = vset.pattern.permute.xlu0 %v642_v4  ;;  %v161_v4 = vrot.slane %v469_v58, %v750_v63 }
  0xbd   :  { %155 = vperm.xlu1 %519, %v712_v29   ;;  %165 = vperm.xlu0 %520, %v712_v29  }
  0xc1   :  { %521 = vset.pattern.permute.xlu1 %v643_v5  ;;  %523 = vset.pattern.permute.xlu0 %v644_v30  ;;  %v753_v5 = vsub.s32 3, %v139_v56  ;;  %v470_v30 = vunpack.c.h.bf16 %v468_v57 }
  0xc2   :  { %175 = vperm.xlu1 %521, %v712_v29   ;;  %195 = vperm.xlu0 %523, %v712_v29  }
  0xc3   :  { %v171_v10 = vrot.slane %v469_v58, %v753_v5  ;;  %v281_v58 = vrot.slane %v470_v30, %v761_v19 }
  0xc6   :  { %522 = vset.pattern.permute.xlu1 %v645_v31  ;;  %526 = vset.pattern.permute.xlu0 %v646_v32 }
  0xc7   :  { %185 = vperm.xlu1 %522, %v712_v29   ;;  %225 = vperm.xlu0 %526, %v712_v29  }
  0xcb   :  { %524 = vset.pattern.permute.xlu1 %v647_v33  ;;  %529 = vset.pattern.permute.xlu0 %v648_v34  ;;  %v221_v34 = vrot.slane %v470_v30, %v746_v60 }
  0xcc   :  { %205 = vperm.xlu1 %524, %v712_v29   ;;  %255 = vperm.xlu0 %529, %v712_v29  }
  0xd0   :  { %525 = vset.pattern.permute.xlu1 %v649_v35  ;;  %532 = vset.pattern.permute.xlu0 %v650_v36  ;;  %v231_v36 = vrot.slane %v470_v30, %v744_v59 }
  0xd1   :  { %215 = vperm.xlu1 %525, %v712_v29   ;;  %285 = vperm.xlu0 %532, %v712_v29  }
  0xd5   :  { %527 = vset.pattern.permute.xlu1 %v651_v37  ;;  %535 = vset.pattern.permute.xlu0 %v652_v38 }
  0xd6   :  { %235 = vperm.xlu1 %527, %v712_v29   ;;  %315 = vperm.xlu0 %535, %v712_v29  }
  0xda   :  { %528 = vset.pattern.permute.xlu1 %v653_v39  ;;  %538 = vset.pattern.permute.xlu0 %v654_v40 }
  0xdb   :  { %245 = vperm.xlu1 %528, %v712_v29   ;;  %345 = vperm.xlu0 %538, %v712_v29  }
  0xdf   :  { %530 = vset.pattern.permute.xlu1 %v655_v41  ;;  %541 = vset.pattern.permute.xlu0 %v656_v42  ;;  %v241_v41 = vrot.slane %v470_v30, %v750_v63 }
  0xe0   :  { %265 = vperm.xlu1 %530, %v712_v29   ;;  %375 = vperm.xlu0 %541, %v712_v29  }
  0xe4   :  { %531 = vset.pattern.permute.xlu1 %v657_v43  ;;  %544 = vset.pattern.permute.xlu0 %v658_v44 }
  0xe5   :  { %275 = vperm.xlu1 %531, %v712_v29   ;;  %405 = vperm.xlu0 %544, %v712_v29  }
  0xe9   :  { %533 = vset.pattern.permute.xlu1 %v659_v45  ;;  %547 = vset.pattern.permute.xlu0 %v660_v46 }
  0xea   :  { %295 = vperm.xlu1 %533, %v712_v29  }
  0xee   :  { %534 = vset.pattern.permute.xlu1 %v661_v47 }
  0xef   :  { %305 = vperm.xlu1 %534, %v712_v29  }
  0xf3   :  { %536 = vset.pattern.permute.xlu1 %v662_v48  ;;  %v261_v48 = vrot.slane %v470_v30, %v755_v6 }
  0xf4   :  { %325 = vperm.xlu1 %536, %v712_v29  }
  0xf8   :  { %537 = vset.pattern.permute.xlu1 %v663_v49 }
  0xf9   :  { %335 = vperm.xlu1 %537, %v712_v29  }
  0xfd   :  { %539 = vset.pattern.permute.xlu1 %v664_v50 }
  0xfe   :  { %355 = vperm.xlu1 %539, %v712_v29  }
 0x102   :  { %540 = vset.pattern.permute.xlu1 %v665_v51 }
 0x103   :  { %365 = vperm.xlu1 %540, %v712_v29  }
 0x107   :  { %542 = vset.pattern.permute.xlu1 %v666_v52 }
 0x108   :  { %385 = vperm.xlu1 %542, %v712_v29  }
 0x10c   :  { %543 = vset.pattern.permute.xlu1 %v667_v53  ;;  %v271_v53 = vrot.slane %v470_v30, %v759_v14 }
 0x10d   :  { %395 = vperm.xlu1 %543, %v712_v29  }
 0x111   :  { %545 = vset.pattern.permute.xlu1 %v668_v54 }
 0x112   :  { %415 = vperm.xlu1 %545, %v712_v29  }
 0x116   :  { %546 = vset.pattern.permute.xlu1 %v660_v46  ;;  %v251_v46 = vrot.slane %v470_v30, %v753_v5 }
 0x117   :  { %425 = vperm.xlu1 %546, %v712_v29  }
 0x133   :  { %v146_v0 = vpop.permute.xlu1 %145  ;;  %v136_v1 = vpop.permute.xlu0 %135 }
 0x134   :  { %v152_v2 = vmul.f32 %v151_v61, %v146_v0  ;;  %v142_v3 = vmul.f32 %v141_v62, %v136_v1  ;;  %v475_v61 = vld [vmem:[#allocation7 + $0x8] sm:$0xff]   ;;  %v291_v0 = vrot.slane %v470_v30, %v764_v21 }
 0x135   :  { %v473_v1 = vunpack.c.l.bf16 %v475_v61 }
 0x136   :  { %v153_v8 = vadd.f32 %v152_v2, %v142_v3 }
 0x137   :  { %v351_v30 = vrot.slane %v473_v1, %v759_v14 }
 0x138   :  { %v156_v7 = vpop.permute.xlu1 %155  ;;  %v166_v11 = vpop.permute.xlu0 %165 }
 0x139   :  { %v162_v9 = vmul.f32 %v161_v4, %v156_v7  ;;  %v172_v15 = vmul.f32 %v171_v10, %v166_v11 }
 0x13b   :  { %v163_v12 = vadd.f32 %v162_v9, %v153_v8  ;;  %v301_v8 = vrot.slane %v473_v1, %v746_v60 }
 0x13d   :  { %v176_v16 = vpop.permute.xlu1 %175  ;;  %v173_v17 = vadd.f32 %v172_v15, %v163_v12  ;;  %v196_v26 = vpop.permute.xlu0 %195 }
 0x13e   :  { %v182_v18 = vmul.f32 %v181_v13, %v176_v16  ;;  %v202_v29 = vmul.f32 %v201_v24, %v196_v26  ;;  %v311_v13 = vrot.slane %v473_v1, %v744_v59  ;;  %v321_v16 = vrot.slane %v473_v1, %v750_v63 }
 0x140   :  { %v183_v23 = vadd.f32 %v182_v18, %v173_v17 }
 0x142   :  { %v186_v22 = vpop.permute.xlu1 %185  ;;  %v226_v39 = vpop.permute.xlu0 %225 }
 0x143   :  { %v192_v25 = vmul.f32 %v191_v20, %v186_v22  ;;  %v232_v42 = vmul.f32 %v231_v36, %v226_v39 }
 0x145   :  { %v193_v27 = vadd.f32 %v192_v25, %v183_v23  ;;  %v331_v23 = vrot.slane %v473_v1, %v753_v5 }
 0x147   :  { %v206_v31 = vpop.permute.xlu1 %205  ;;  %v203_v32 = vadd.f32 %v202_v29, %v193_v27  ;;  %v256_v51 = vpop.permute.xlu0 %255 }
 0x148   :  { %v212_v33 = vmul.f32 %v211_v28, %v206_v31  ;;  %v262_v54 = vmul.f32 %v261_v48, %v256_v51  ;;  %v341_v28 = vrot.slane %v473_v1, %v755_v6 }
 0x14a   :  { %v213_v37 = vadd.f32 %v212_v33, %v203_v32 }
 0x14c   :  { %v216_v35 = vpop.permute.xlu1 %215  ;;  %v286_v4 = vpop.permute.xlu0 %285 }
 0x14d   :  { %v222_v38 = vmul.f32 %v221_v34, %v216_v35  ;;  %v292_v9 = vmul.f32 %v291_v0, %v286_v4  ;;  %v361_v35 = vrot.slane %v473_v1, %v761_v19 }
 0x14f   :  { %v223_v40 = vadd.f32 %v222_v38, %v213_v37  ;;  %v474_v38 = vunpack.c.h.bf16 %v475_v61 }
 0x151   :  { %v236_v43 = vpop.permute.xlu1 %235  ;;  %v233_v44 = vadd.f32 %v232_v42, %v223_v40  ;;  %v316_v20 = vpop.permute.xlu0 %315  ;;  %v391_v48 = vrot.slane %v474_v38, %v744_v59  ;;  %v431_v59 = vrot.slane %v474_v38, %v759_v14 }
 0x152   :  { %v242_v45 = vmul.f32 %v241_v41, %v236_v43  ;;  %v322_v24 = vmul.f32 %v321_v16, %v316_v20  ;;  %v371_v41 = vrot.slane %v473_v1, %v764_v21  ;;  %v381_v43 = vrot.slane %v474_v38, %v746_v60 }
 0x153   :  { %v421_v60 = vrot.slane %v474_v38, %v755_v6 }
 0x154   :  { %v243_v49 = vadd.f32 %v242_v45, %v233_v44 }
 0x156   :  { %v246_v47 = vpop.permute.xlu1 %245  ;;  %v346_v33 = vpop.permute.xlu0 %345 }
 0x157   :  { %v252_v50 = vmul.f32 %v251_v46, %v246_v47  ;;  %v352_v36 = vmul.f32 %v351_v30, %v346_v33 }
 0x159   :  { %v253_v52 = vadd.f32 %v252_v50, %v243_v49 }
 0x15b   :  { %v266_v55 = vpop.permute.xlu1 %265  ;;  %v263_v56 = vadd.f32 %v262_v54, %v253_v52  ;;  %v376_v46 = vpop.permute.xlu0 %375  ;;  %v401_v52 = vrot.slane %v474_v38, %v750_v63  ;;  %v411_v54 = vrot.slane %v474_v38, %v753_v5  ;;  %v466_v63 = vld [vmem:[%s800_s4] ss:$0 sm:$0xff] }
 0x15c   :  { %v272_v57 = vmul.f32 %v271_v53, %v266_v55  ;;  %v382_v49 = vmul.f32 %v381_v43, %v376_v46 }
 0x15e   :  { %v273_v2 = vadd.f32 %v272_v57, %v263_v56 }
 0x160   :  { %v276_v62 = vpop.permute.xlu1 %275  ;;  %v406_v56 = vpop.permute.xlu0 %405 }
 0x161   :  { %v282_v3 = vmul.f32 %v281_v58, %v276_v62  ;;  %v412_v58 = vmul.f32 %v411_v54, %v406_v56 }
 0x163   :  { %v283_v7 = vadd.f32 %v282_v3, %v273_v2 }
 0x165   :  { %v296_v10 = vpop.permute.xlu1 %295  ;;  %v293_v11 = vadd.f32 %v292_v9, %v283_v7 }
 0x166   :  { %v302_v12 = vmul.f32 %v301_v8, %v296_v10 }
 0x168   :  { %v303_v17 = vadd.f32 %v302_v12, %v293_v11 }
 0x16a   :  { %v306_v15 = vpop.permute.xlu1 %305 }
 0x16b   :  { %v312_v18 = vmul.f32 %v311_v13, %v306_v15 }
 0x16d   :  { %v313_v22 = vadd.f32 %v312_v18, %v303_v17 }
 0x16f   :  { %v326_v25 = vpop.permute.xlu1 %325  ;;  %v323_v26 = vadd.f32 %v322_v24, %v313_v22 }
 0x170   :  { %v332_v27 = vmul.f32 %v331_v23, %v326_v25 }
 0x172   :  { %v333_v31 = vadd.f32 %v332_v27, %v323_v26 }
 0x174   :  { %v336_v29 = vpop.permute.xlu1 %335 }
 0x175   :  { %v342_v32 = vmul.f32 %v341_v28, %v336_v29 }
 0x177   :  { %v343_v34 = vadd.f32 %v342_v32, %v333_v31 }
 0x179   :  { %v356_v37 = vpop.permute.xlu1 %355  ;;  %v353_v39 = vadd.f32 %v352_v36, %v343_v34 }
 0x17a   :  { %v362_v40 = vmul.f32 %v361_v35, %v356_v37 }
 0x17c   :  { %v363_v44 = vadd.f32 %v362_v40, %v353_v39 }
 0x17e   :  { %v366_v42 = vpop.permute.xlu1 %365 }
 0x17f   :  { %v372_v45 = vmul.f32 %v371_v41, %v366_v42 }
 0x181   :  { %v373_v47 = vadd.f32 %v372_v45, %v363_v44 }
 0x183   :  { %v386_v50 = vpop.permute.xlu1 %385  ;;  %v383_v51 = vadd.f32 %v382_v49, %v373_v47 }
 0x184   :  { %v392_v19 = vmul.f32 %v391_v48, %v386_v50 }
 0x186   :  { %v393_v55 = vadd.f32 %v392_v19, %v383_v51 }
 0x188   :  { %v396_v53 = vpop.permute.xlu1 %395 }
 0x189   :  { %v402_v21 = vmul.f32 %v401_v52, %v396_v53 }
 0x18b   :  { %v403_v57 = vadd.f32 %v402_v21, %v393_v55 }
 0x18d   :  { %v416_v61 = vpop.permute.xlu1 %415  ;;  %v413_v62 = vadd.f32 %v412_v58, %v403_v57 }
 0x18e   :  { %v422_v0 = vmul.f32 %v421_v60, %v416_v61 }
 0x190   :  { %v423_v2 = vadd.f32 %v422_v0, %v413_v62 }
 0x192   :  { %v426_v1 = vpop.permute.xlu1 %425 }
 0x193   :  { %v432_v3 = vmul.f32 %v431_v59, %v426_v1 }
 0x195   :  { %v433_v5 = vadd.f32 %v432_v3, %v423_v2 }
 0x197   :  { %v441_v4 = vadd.f32 %v466_v63, %v433_v5 }
 0x199   :  { %443 = vst.msk [vmem:[#allocation8] sm:$0x3] %vm442_vm0, %v441_v4 }
 0x19a   :  { %619 = shalt.err (!%p616_p5)
}
 0x19b   :  { %453 = dma.vmem_to_hbm [thread:$0]  %s451_s11, 32, %s801_s5, [#allocation4]  }
 0x19c   :  { %632 = dma.done.wait [#allocation4], 32  }
 0x19d   :  { %633 = vsyncadd [#allocation4], 4294967264 }
 0x19e   :  { %457 = vsyncpa [#allocation3], 1 }
 0x19f   :  { %458 = vsyncpa [#allocation6], 1 }
 0x1a0   :  { %459 = vsyncpa [#allocation4], 1 }

</bundles_post_ra>
